<compile_context>
chip_gen: v6e
topology: v6e:2x2x1
jax: 0.10.0
libtpu: 0.0.40
codegen_flags: <defaults>
</compile_context>

<pallas_src>
import jax
import jax.numpy as jnp
from jax.experimental import pallas as pl
from jax.experimental.pallas import tpu as pltpu

LANE_WIDTHS = (1024, 512, 256, 128)     # candidate lane-dense slab widths
TARGET_BLOCK_BYTES = 2 * 1024 * 1024    # ~2 MiB per grid block
MIN_PALLAS_ELEMS = 2048                 # below this, launch overhead >> work


def _round_up(x, m):
    return ((x + m - 1) // m) * m


def _affine_kernel(x_ref, w_ref, b_ref, o_ref):
    # x_ref/o_ref: (tile_rows, W) tiles in VMEM (x in its native dtype).
    # w_ref/b_ref: (1, 1) f32 scalars in SMEM.
    w = w_ref[0, 0]
    b = b_ref[0, 0]
    x = x_ref[...].astype(jnp.float32)          # cast per-tile (VPU), not in the wrapper
    o_ref[...] = (x * w + b).astype(o_ref.dtype)


def linear_regression_forward(x, weight, bias):
    """Forward pass of nn.Linear(1, 1): y = x @ W^T + b.

    x:      (N, 1)
    weight: (1, 1)   (PyTorch stores Linear weight as (out_features, in_features))
    bias:   (1,)
    returns (N, 1)
    """
    n, in_f = x.shape
    assert in_f == 1 and weight.shape == (1, 1) and bias.shape == (1,)

    wf = weight.astype(jnp.float32)
    bf = bias.astype(jnp.float32)
    out_dtype = jnp.result_type(x.dtype, weight.dtype)

    # Largest multiple-of-128 lane width that divides N exactly, so the
    # (N, 1) -> (rows, W) reshape is a free bitcast (no pad, no copy).
    lane_width = next((w for w in LANE_WIDTHS if n % w == 0), None)

    if n < MIN_PALLAS_ELEMS or lane_width is None:
        # Tiny or ragged N: fused XLA x*w+b is a single 1-read/1-write pass at
        # HBM roofline; a Pallas path needing pad+slice copies would be slower.
        y = x.astype(jnp.float32) * wf[0, 0] + bf[0]
        return y.astype(out_dtype)

    rows = n // lane_width
    x_slab = x.reshape(rows, lane_width)        # free reshape (no data movement)

    # Block sizing: ~2 MiB blocks, sublane dim a multiple of 8, and an even
    # block count so the "parallel" grid splits across both v7x TensorCores.
    cap_rows = max(8, (TARGET_BLOCK_BYTES // (lane_width * x.dtype.itemsize)) // 8 * 8)
    if rows <= 16:
        tile_rows = rows                        # single full-extent block
    else:
        nblocks = max(2, pl.cdiv(rows, cap_rows))
        if nblocks % 2:
            nblocks += 1
        tile_rows = min(rows, _round_up(pl.cdiv(rows, nblocks), 8))
    grid = (pl.cdiv(rows, tile_rows),)          # ragged last row-block is handled by Pallas

    out_slab = pl.pallas_call(
        _affine_kernel,
        out_shape=jax.ShapeDtypeStruct((rows, lane_width), out_dtype),
        grid=grid,
        in_specs=[
            pl.BlockSpec((tile_rows, lane_width), lambda i: (i, 0)),   # x tile
            pl.BlockSpec(memory_space=pltpu.MemorySpace.SMEM),         # w scalar
            pl.BlockSpec(memory_space=pltpu.MemorySpace.SMEM),         # b scalar
        ],
        out_specs=pl.BlockSpec((tile_rows, lane_width), lambda i: (i, 0)),
        compiler_params=pltpu.CompilerParams(
            dimension_semantics=("parallel",),  # shard row blocks across TCs (v7x)
        ),
    )(x_slab, wf.reshape(1, 1), bf.reshape(1, 1))

    return out_slab.reshape(n, 1)               # free reshape back, no slice/copy


if __name__ == "__main__":
    key = jax.random.PRNGKey(0)
    k_w, k_b, k1, k2, k3, k4 = jax.random.split(key, 6)

    # nn.Linear(1,1) init range: uniform(-1, 1) since 1/sqrt(in_features) = 1
    weight = jax.random.uniform(k_w, (1, 1), jnp.float32, minval=-1.0, maxval=1.0)
    bias = jax.random.uniform(k_b, (1,), jnp.float32, minval=-1.0, maxval=1.0)

    def ref(x):
        return x @ weight.T + bias

    # 1) Pallas path: rows=40, even 2-block grid with a ragged final row-block
    #    (exercises multi-block pipelining + Pallas boundary handling).
    n1 = 40 * 1024
    x1 = jax.random.normal(k1, (n1, 1), jnp.float32)
    y1 = jax.block_until_ready(linear_regression_forward(x1, weight, bias))
    assert y1.shape == (n1, 1)
    assert jnp.allclose(y1, ref(x1), atol=1e-5), "pallas multi-block mismatch"

    # 2) Pallas path: small single full-extent block.
    n2 = 8192
    x2 = jax.random.normal(k2, (n2, 1), jnp.float32)
    y2 = jax.block_until_ready(linear_regression_forward(x2, weight, bias))
    assert jnp.allclose(y2, ref(x2), atol=1e-5), "pallas single-block mismatch"

    # 3) Ragged N (not a multiple of 128) -> fused-XLA affine path.
    n3 = 5000
    x3 = jax.random.normal(k3, (n3, 1), jnp.float32)
    y3 = jax.block_until_ready(linear_regression_forward(x3, weight, bias))
    assert jnp.allclose(y3, ref(x3), atol=1e-6), "ragged fallback mismatch"

    # 4) Tiny batch -> fused-XLA affine path (no kernel launch overhead).
    n4 = 8
    x4 = jax.random.normal(k4, (n4, 1), jnp.float32)
    y4 = jax.block_until_ready(linear_regression_forward(x4, weight, bias))
    assert jnp.allclose(y4, ref(x4), atol=1e-6), "tiny fallback mismatch"

    print("KERNEL_OK")
</pallas_src>

<mosaic_0001>
module attributes {stable_mosaic.version = 11 : i64} {
  func.func @_affine_kernel(%arg0: i32, %arg1: memref<24x1024xf32, #tpu.memory_space<vmem>>, %arg2: memref<1x1xf32, #tpu.memory_space<smem>>, %arg3: memref<1x1xf32, #tpu.memory_space<smem>>, %arg4: memref<24x1024xf32, #tpu.memory_space<vmem>>) attributes {dimension_semantics = [#tpu.dimension_semantics<parallel>], iteration_bounds = array<i64: 2>, scalar_prefetch = 0 : i64, scratch_operands = 0 : i64, tpu.core_type = #tpu.core_type<tc>, window_params = [{transform_indices = @transform_0, window_bounds = array<i64: 24, 1024>}, {transform_indices = @transform_1, window_bounds = array<i64: 1, 1>}, {transform_indices = @transform_2, window_bounds = array<i64: 1, 1>}, {transform_indices = @transform_3, window_bounds = array<i64: 24, 1024>}]} {
    %c0 = arith.constant 0 : index
    %c0_0 = arith.constant 0 : index
    %0 = memref.load %arg2[%c0, %c0_0] : memref<1x1xf32, #tpu.memory_space<smem>>
    %c0_1 = arith.constant 0 : index
    %c0_2 = arith.constant 0 : index
    %1 = memref.load %arg3[%c0_1, %c0_2] : memref<1x1xf32, #tpu.memory_space<smem>>
    %c0_3 = arith.constant 0 : index
    %c0_4 = arith.constant 0 : index
    %2 = vector.load %arg1[%c0_3, %c0_4] : memref<24x1024xf32, #tpu.memory_space<vmem>>, vector<24x1024xf32>
    %3 = vector.broadcast %0 : f32 to vector<24x1024xf32>
    %4 = arith.mulf %2, %3 : vector<24x1024xf32>
    %5 = vector.broadcast %1 : f32 to vector<24x1024xf32>
    %6 = arith.addf %4, %5 : vector<24x1024xf32>
    %c0_5 = arith.constant 0 : index
    %c0_6 = arith.constant 0 : index
    %7 = vector.load %arg4[%c0_5, %c0_6] : memref<24x1024xf32, #tpu.memory_space<vmem>>, vector<24x1024xf32>
    tpu.vector_store %arg4[%c0_5, %c0_6], %6 {strides = array<i32>} : memref<24x1024xf32, #tpu.memory_space<vmem>>, vector<24x1024xf32>,
    return
  }
  func.func @transform_0(%arg0: i32) -> (i32, i32) {
    %c0_i32 = arith.constant 0 : i32
    %c0_i32_0 = arith.constant 0 : i32
    return %arg0, %c0_i32 : i32, i32
  }
  func.func @transform_1(%arg0: i32) -> (i32, i32) {
    %c0_i32 = arith.constant 0 : i32
    %c0_i32_0 = arith.constant 0 : i32
    %c0_i32_1 = arith.constant 0 : i32
    return %c0_i32, %c0_i32_0 : i32, i32
  }
  func.func @transform_2(%arg0: i32) -> (i32, i32) {
    %c0_i32 = arith.constant 0 : i32
    %c0_i32_0 = arith.constant 0 : i32
    %c0_i32_1 = arith.constant 0 : i32
    return %c0_i32, %c0_i32_0 : i32, i32
  }
  func.func @transform_3(%arg0: i32) -> (i32, i32) {
    %c0_i32 = arith.constant 0 : i32
    %c0_i32_0 = arith.constant 0 : i32
    return %arg0, %c0_i32 : i32, i32
  }
}

</mosaic_0001>

<bundles_post_ra>
// kernel: tpu_custom_call.1
= control target key start
LH: loop header
LB: loop body
LE: loop exit
PB: predicated region body
PF: predicated region fallthrough
CT: control target
= control target key end

     0   :  { %s880_s0 = inlined_call_operand.hbm [shape: f32[40,1024], index: 0, kind: input, shape index: {}]   ;;  %s881_s1 = inlined_call_operand.<no memory space> [shape: f32[1,1], index: 1, kind: input, shape index: {}]   ;;  %s882_s2 = inlined_call_operand.<no memory space> [shape: f32[1,1], index: 2, kind: input, shape index: {}]   ;;  %s883_s3 = inlined_call_operand.hbm [shape: f32[40,1024], index: 3, kind: output, shape index: {}]  }
   0x1   :  { %8 = sst [smem:[#allocation2]] %s881_s1 }
   0x2   :  { %9 = sst [smem:[#allocation3]] %s882_s2 }
   0x3   :  { %10 = vsyncpa [#allocation5], 0 }
   0x4   :  { %12 = vsyncpa [#allocation5 + $0x1], 0 }
   0x5   :  { %13 = vsyncpa [#allocation6], 0 }
   0x6   :  { %15 = vsyncpa [#allocation6 + $0x1], 0  ;;  %s603_s16 = smov 0   ;;  %s605_s17 = smov 0  }
   0x7   :  { %s607_s18 = smov 0   ;;  %s609_s19 = smov 0  }
   0x8 LB: > { %s624_s1 = sadd.s32 4294967295, %s569_s19   ;;  %s406_s2 = sadd.s32 4294967294, %s569_s19   ;;  %s569_s19 = sphi %s609_s19, %s893_s19   ;;  %s565_s18 = sphi %s607_s18, %s892_s18   ;;  %s561_s17 = sphi %s605_s17, %s891_s17   ;;  %s557_s16 = sphi %s603_s16, %s890_s16  }
   0x9   : > { %s628_s20 = sadd.s32 1, %s569_s19   ;;  %s28_s21 = sadd.s32 1, %s565_s18 }
   0xa   : > { %s25_s22 = ssub.s32 %s569_s19, %s628_s20  ;;  %p35_p0 = scmp.ne.s32.totalorder %s565_s18, %s561_s17 }
   0xb   : > { %p26_p1 = scmp.eq.s32.totalorder %s25_s22, 0  ;;  %p36_p2 = scmp.eq.s32.totalorder %s569_s19, 0 }
   0xc   : > { %p41_p3 = scmp.ne.s32.totalorder %s561_s17, %s557_s16  ;;  %p42_p4 = scmp.eq.s32.totalorder %s624_s1, 0 }
   0xd   : > { %s640_s23 = scalar_select %p26_p1, %s565_s18, %s28_s21  }
   0xe   : > { %p37_p5 = por %p36_p2, %p35_p0  ;;  %p642_p6 = por %p42_p4, %p41_p3 }
   0xf   : > { %p107_p7 = scmp.eq.s32.totalorder %s624_s1, 1  ;;  %p113_p8 = scmp.eq.s32.totalorder %s406_s2, 1 }
  0x10   : > { %p884_p11 = scmp.ge.s32.totalorder %s569_s19, 2 }
  0x11   : > { %p647_p9 = por %p107_p7, %p35_p0  ;;  %p651_p10 = por %p113_p8, %p41_p3 }
  0x12   : > { %135 = sbr.rel (%p884_p11) target bundleno = 57 (0x39), region = 24 }
  0x13   : > { %s887_s26 = scalar_select %p651_p10, 1, 0 }
  0x17   : > { %138 = sbr.rel (!%p37_p5) target bundleno = 57 (0x39), region = 28  ;;  %s139_s27 = sand.u32 (%p37_p5), 1, %s565_s18  }
  0x18   : > { %s144_s28 = smul.u32 (%p37_p5), 3, %s569_s19  ;;  %s663_s6 = scalar_lea.sflag (%p37_p5), [#allocation5], %s139_s27 }
  0x19   : > { %s434_s29 = smul.u32 (%p37_p5), 192, %s139_s27 }
  0x1a   : > { %s145_s30 = ssub.s32 (%p37_p5), 5, %s144_s28 }
  0x1b   : > { %p146_p12 = scmp.lt.s32.totalorder (%p37_p5), %s145_s30, 3  ;;  %s143_s7 = scalar_lea.vmem (%p37_p5), [#allocation4], %s434_s29 }
  0x1d   : > { %s895_s30 = smov (!%p146_p12, %s145_s30), 3 }
  0x1e   : > { %s660_s4 = sshll.u32 %s895_s30, 10 }
  0x1f   : > { %s151_s5 = ssub.s32 3072, %s660_s4 }
  0x20   : > { %152 = vsyncadd %s663_s6, %s151_s5  ;;  %p411_p13 = scmp.ne.s32.totalorder %s660_s4, 0  ;;  %s432_s8 = smul.u32 3072, %s569_s19 }
  0x21   : > { %s158_s9 = sshll.u32 %s143_s7, 4  ;;  %s483_s2 = scalar_lea.hbm %s880_s0, 5120  ;;  %s673_s9 = int_to_ptr.vmem [resolvable:$true] %s158_s9 }
  0x22   : > { %s671_s12 = scalar_lea.hbm %s880_s0, %s432_s8 }
  0x23   : > { %s479_s13 = scalar_lea.hbm %s671_s12, %s660_s4  ;;  %p484_p3 = scmp.lt.s32.totalorder %s671_s12, %s880_s0 }
  0x24   : > { %p480_p0 = scmp.ne.s32.totalorder %s671_s12, %s479_s13  ;;  %p485_p4 = scmp.lt.s32.totalorder %s483_s2, %s479_s13 }
  0x26   : > { %p481_p1 = pnand %p480_p0, %p411_p13  ;;  %p486_p5 = por %p485_p4, %p484_p3 }
  0x28   : > { %p482_p2 = pneg %p481_p1 }
  0x2a   : > { %p487_p7 = pnand %p486_p5, %p482_p2 }
  0x2c   : > { %490 = shalt.err (!%p487_p7)
}
  0x2d   : > { %s491_s27 = scalar_lea.vmem %s673_s9, %s660_s4  ;;  %s571_s28 = smov [#allocation4]  }
  0x2e   : > { %p492_p8 = scmp.ne.s32.totalorder %s673_s9, %s491_s27  ;;  %s495_s29 = sshll.u32 %s571_s28, 4  ;;  %s496_s29 = int_to_ptr.vmem [resolvable:$false] %s495_s29 }
  0x2f   : > { %s497_s30 = scalar_lea.vmem %s496_s29, 6144  ;;  %p498_p1 = scmp.lt.s32.totalorder %s673_s9, %s496_s29 }
  0x30   : > { %p493_p12 = pnand %p492_p8, %p411_p13  ;;  %p499_p11 = scmp.lt.s32.totalorder %s497_s30, %s491_s27 }
  0x32   : > { %p494_p0 = pneg %p493_p12  ;;  %p500_p10 = por %p499_p11, %p498_p1 }
  0x34   : > { %p501_p3 = pnand %p500_p10, %p494_p0 }
  0x36   : > { %504 = shalt.err (!%p501_p3)
}
  0x37   : > { %s572_s5 = smov 1024   ;;  %s573_s7 = smov 64  }
  0x38   : > { %164 = dma.hbm_to_vmem [thread:$0]  (%p411_p13), %s671_s12, %s660_s4, %s673_s9, %s663_s6, %s572_s5, %s572_s5, %s573_s7  }
  0x39 PF: > { %p416_p2 = scmp.ge.s32.totalorder %s569_s19, 1  ;;  %p166_p4 = scmp.lt.s32.totalorder %s569_s19, 3 }
  0x3b   : > { %p167_p5 = pnand %p416_p2, %p166_p4 }
  0x3c   : > { %s702_s8 = sand.u32 (!%p167_p5), 1, %s561_s17  }
  0x3d   : > { %170 = sbr.rel (%p167_p5) target bundleno = 119 (0x77), region = 32  ;;  %s173_s11 = scalar_lea.sflag (!%p167_p5), [#allocation5], %s702_s8 }
  0x3e   : > { %s435_s10 = smul.u32 (!%p167_p5), 192, %s702_s8 }
  0x40   : > { %s708_s13 = scalar_lea.vmem (!%p167_p5), [#allocation4], %s435_s10 }
  0x42   : > { %548 = dma.done.wait (%p642_p6), %s173_s11, 3072  }
  0x43   : > { %550 = vsyncadd (%p642_p6), %s173_s11, 4294964224  ;;  %s211_s4 = sld [smem:[#allocation2]]  ;;  %v213_v0 = vld [vmem:[%s708_s13] sm:$0xff]  ;;  %v214_v2 = vld [vmem:[%s708_s13 + $0x8] sm:$0xff]  ;;  %s749_s24 = scalar_lea.vmem [#allocation7], %s435_s10 }
  0x44   : > { %s212_s6 = sld [smem:[#allocation3]]  ;;  %v215_v3 = vld [vmem:[%s708_s13 + $0x10] sm:$0xff]  ;;  %v216_v8 = vld [vmem:[%s708_s13 + $0x18] sm:$0xff]  ;;  %v217_v9 = vld [vmem:[%s708_s13 + $0x20] sm:$0xff]  ;;  %s312_s9 = scalar_lea.sflag [#allocation6], %s702_s8 }
  0x45   : > { %v218_v10 = vld [vmem:[%s708_s13 + $0x28] sm:$0xff]  ;;  %v219_v14 = vld [vmem:[%s708_s13 + $0x30] sm:$0xff]  ;;  %v220_v15 = vld [vmem:[%s708_s13 + $0x38] sm:$0xff]  ;;  %s319_s12 = smul.u32 (%p647_p9), 3, %s624_s1 }
  0x46   : > { %v221_v16 = vld [vmem:[%s708_s13 + $0x40] sm:$0xff]  ;;  %v222_v21 = vld [vmem:[%s708_s13 + $0x48] sm:$0xff]  ;;  %v223_v22 = vld [vmem:[%s708_s13 + $0x50] sm:$0xff] }
  0x47   : > { %v224_v23 = vld [vmem:[%s708_s13 + $0x58] sm:$0xff]  ;;  %v225_v28 = vld [vmem:[%s708_s13 + $0x60] sm:$0xff]  ;;  %v226_v29 = vld [vmem:[%s708_s13 + $0x68] sm:$0xff]  ;;  %s320_s14 = ssub.s32 (%p647_p9), 5, %s319_s12 }
  0x48   : > { %v227_v30 = vld [vmem:[%s708_s13 + $0x70] sm:$0xff]  ;;  %v228_v35 = vld [vmem:[%s708_s13 + $0x78] sm:$0xff]  ;;  %v229_v40 = vld [vmem:[%s708_s13 + $0x80] sm:$0xff]  ;;  %p321_p6 = scmp.lt.s32.totalorder (%p647_p9), %s320_s14, 3 }
  0x49   : > { %v715_v1 = vstv %s211_s4  ;;  %v230_v41 = vld [vmem:[%s708_s13 + $0x88] sm:$0xff]  ;;  %v231_v42 = vld [vmem:[%s708_s13 + $0x90] sm:$0xff]  ;;  %v232_v47 = vld [vmem:[%s708_s13 + $0x98] sm:$0xff] }
  0x4a   : > { %v238_v4 = vmul.f32 %v715_v1, %v213_v0  ;;  %v720_v5 = vstv %s212_s6  ;;  %v239_v6 = vmul.f32 %v715_v1, %v214_v2  ;;  %v240_v7 = vmul.f32 %v715_v1, %v215_v3  ;;  %v233_v48 = vld [vmem:[%s708_s13 + $0xa0] sm:$0xff]  ;;  %v234_v49 = vld [vmem:[%s708_s13 + $0xa8] sm:$0xff]  ;;  %v235_v54 = vld [vmem:[%s708_s13 + $0xb0] sm:$0xff] }
  0x4b   : > { %v241_v11 = vmul.f32 %v715_v1, %v216_v8  ;;  %v242_v12 = vmul.f32 %v715_v1, %v217_v9  ;;  %v243_v13 = vmul.f32 %v715_v1, %v218_v10  ;;  %v244_v20 = vmul.f32 %v715_v1, %v219_v14  ;;  %v236_v59 = vld [vmem:[%s708_s13 + $0xb8] sm:$0xff] }
  0x4c   : > { %v263_v17 = vadd.f32 %v720_v5, %v238_v4  ;;  %v264_v18 = vadd.f32 %v720_v5, %v239_v6  ;;  %v265_v19 = vadd.f32 %v720_v5, %v240_v7  ;;  %v245_v27 = vmul.f32 %v715_v1, %v220_v15 }
  0x4d   : > { %v266_v24 = vadd.f32 %v720_v5, %v241_v11  ;;  %v267_v25 = vadd.f32 %v720_v5, %v242_v12  ;;  %v268_v26 = vadd.f32 %v720_v5, %v243_v13  ;;  %v269_v31 = vadd.f32 %v720_v5, %v244_v20 }
  0x4e   : > { %287 = vst [vmem:[%s749_s24] sm:$0xff] %v263_v17  ;;  %288 = vst [vmem:[%s749_s24 + $0x8] sm:$0xff] %v264_v18  ;;  %v246_v32 = vmul.f32 %v715_v1, %v221_v16  ;;  %v247_v33 = vmul.f32 %v715_v1, %v222_v21  ;;  %v248_v34 = vmul.f32 %v715_v1, %v223_v22 }
  0x4f   : > { %289 = vst [vmem:[%s749_s24 + $0x10] sm:$0xff] %v265_v19  ;;  %290 = vst [vmem:[%s749_s24 + $0x18] sm:$0xff] %v266_v24  ;;  %v270_v36 = vadd.f32 %v720_v5, %v245_v27  ;;  %v249_v37 = vmul.f32 %v715_v1, %v224_v23  ;;  %v250_v38 = vmul.f32 %v715_v1, %v225_v28 }
  0x50   : > { %291 = vst [vmem:[%s749_s24 + $0x20] sm:$0xff] %v267_v25  ;;  %292 = vst [vmem:[%s749_s24 + $0x28] sm:$0xff] %v268_v26  ;;  %v251_v39 = vmul.f32 %v715_v1, %v226_v29  ;;  %v271_v43 = vadd.f32 %v720_v5, %v246_v32  ;;  %v272_v44 = vadd.f32 %v720_v5, %v247_v33 }
  0x51   : > { %293 = vst [vmem:[%s749_s24 + $0x30] sm:$0xff] %v269_v31  ;;  %v273_v45 = vadd.f32 %v720_v5, %v248_v34  ;;  %v252_v46 = vmul.f32 %v715_v1, %v227_v30  ;;  %294 = vst [vmem:[%s749_s24 + $0x38] sm:$0xff] %v270_v36  ;;  %v274_v50 = vadd.f32 %v720_v5, %v249_v37 }
  0x52   : > { %v275_v51 = vadd.f32 %v720_v5, %v250_v38  ;;  %v276_v52 = vadd.f32 %v720_v5, %v251_v39  ;;  %v253_v53 = vmul.f32 %v715_v1, %v228_v35  ;;  %295 = vst [vmem:[%s749_s24 + $0x40] sm:$0xff] %v271_v43  ;;  %296 = vst [vmem:[%s749_s24 + $0x48] sm:$0xff] %v272_v44 }
  0x53   : > { %297 = vst [vmem:[%s749_s24 + $0x50] sm:$0xff] %v273_v45  ;;  %v277_v55 = vadd.f32 %v720_v5, %v252_v46  ;;  %v254_v56 = vmul.f32 %v715_v1, %v229_v40  ;;  %v255_v57 = vmul.f32 %v715_v1, %v230_v41  ;;  %v256_v58 = vmul.f32 %v715_v1, %v231_v42 }
  0x54   : > { %298 = vst [vmem:[%s749_s24 + $0x58] sm:$0xff] %v274_v50  ;;  %299 = vst [vmem:[%s749_s24 + $0x60] sm:$0xff] %v275_v51  ;;  %v278_v60 = vadd.f32 %v720_v5, %v253_v53  ;;  %v257_v61 = vmul.f32 %v715_v1, %v232_v47  ;;  %v258_v62 = vmul.f32 %v715_v1, %v233_v48 }
  0x55   : > { %300 = vst [vmem:[%s749_s24 + $0x68] sm:$0xff] %v276_v52  ;;  %v259_v63 = vmul.f32 %v715_v1, %v234_v49  ;;  %301 = vst [vmem:[%s749_s24 + $0x70] sm:$0xff] %v277_v55  ;;  %v279_v0 = vadd.f32 %v720_v5, %v254_v56  ;;  %v280_v2 = vadd.f32 %v720_v5, %v255_v57 }
  0x56   : > { %v281_v3 = vadd.f32 %v720_v5, %v256_v58  ;;  %v260_v4 = vmul.f32 %v715_v1, %v235_v54  ;;  %302 = vst [vmem:[%s749_s24 + $0x78] sm:$0xff] %v278_v60  ;;  %v282_v6 = vadd.f32 %v720_v5, %v257_v61  ;;  %v283_v7 = vadd.f32 %v720_v5, %v258_v62 }
  0x57   : > { %v284_v8 = vadd.f32 %v720_v5, %v259_v63  ;;  %v261_v9 = vmul.f32 %v715_v1, %v236_v59  ;;  %303 = vst [vmem:[%s749_s24 + $0x80] sm:$0xff] %v279_v0  ;;  %304 = vst [vmem:[%s749_s24 + $0x88] sm:$0xff] %v280_v2  ;;  %318 = sbr.rel (!%p647_p9) target bundleno = 119 (0x77), region = 40 }
  0x58   : > { %305 = vst [vmem:[%s749_s24 + $0x90] sm:$0xff] %v281_v3  ;;  %v285_v10 = vadd.f32 %v720_v5, %v260_v4  ;;  %306 = vst [vmem:[%s749_s24 + $0x98] sm:$0xff] %v282_v6 }
  0x59   : > { %307 = vst [vmem:[%s749_s24 + $0xa0] sm:$0xff] %v283_v7  ;;  %308 = vst [vmem:[%s749_s24 + $0xa8] sm:$0xff] %v284_v8  ;;  %v286_v11 = vadd.f32 %v720_v5, %v261_v9 }
  0x5a   : > { %309 = vst [vmem:[%s749_s24 + $0xb0] sm:$0xff] %v285_v10 }
  0x5b   : > { %310 = vst [vmem:[%s749_s24 + $0xb8] sm:$0xff] %v286_v11 }
  0x5c   : > { %s897_s14 = smov (!%p321_p6, %s320_s14), 3 }
  0x5d   : > { %s822_s15 = sshll.u32 %s897_s14, 10 }
  0x5e   : > { %s326_s2 = ssub.s32 3072, %s822_s15 }
  0x5f   : > { %327 = vsyncadd %s312_s9, %s326_s2  ;;  %p419_p10 = scmp.ne.s32.totalorder %s822_s15, 0  ;;  %s433_s25 = smul.u32 3072, %s624_s1 }
  0x60   : > { %s333_s21 = sshll.u32 %s749_s24, 4  ;;  %s574_s30 = smov [#allocation7]   ;;  %s835_s21 = int_to_ptr.vmem [resolvable:$true] %s333_s21 }
  0x61   : > { %s833_s28 = scalar_lea.hbm %s883_s3, %s433_s25  ;;  %s505_s29 = scalar_lea.vmem %s835_s21, %s822_s15 }
  0x62   : > { %p506_p9 = scmp.ne.s32.totalorder %s835_s21, %s505_s29  ;;  %s509_s5 = sshll.u32 %s574_s30, 4  ;;  %s510_s5 = int_to_ptr.vmem [resolvable:$false] %s509_s5 }
  0x63   : > { %s511_s1 = scalar_lea.vmem %s510_s5, 6144  ;;  %p512_p7 = scmp.lt.s32.totalorder %s835_s21, %s510_s5 }
  0x64   : > { %p507_p11 = pnand %p506_p9, %p419_p10  ;;  %p513_p8 = scmp.lt.s32.totalorder %s511_s1, %s505_s29 }
  0x66   : > { %p508_p13 = pneg %p507_p11  ;;  %p514_p12 = por %p513_p8, %p512_p7 }
  0x68   : > { %p515_p0 = pnand %p514_p12, %p508_p13 }
  0x6a   : > { %518 = shalt.err (!%p515_p0)
}
  0x6b   : > { %s519_s7 = scalar_lea.hbm %s833_s28, %s822_s15  ;;  %s523_s13 = scalar_lea.hbm %s883_s3, 5120 }
  0x6c   : > { %p520_p1 = scmp.ne.s32.totalorder %s833_s28, %s519_s7  ;;  %p524_p4 = scmp.lt.s32.totalorder %s833_s28, %s883_s3 }
  0x6d   : > { %p525_p5 = scmp.lt.s32.totalorder %s523_s13, %s519_s7 }
  0x6e   : > { %p521_p3 = pnand %p520_p1, %p419_p10 }
  0x6f   : > { %p526_p6 = por %p525_p5, %p524_p4 }
  0x70   : > { %p522_p2 = pneg %p521_p3 }
  0x72   : > { %p527_p9 = pnand %p526_p6, %p522_p2 }
  0x74   : > { %530 = shalt.err (!%p527_p9)
}
  0x75   : > { %s575_s24 = smov 1024   ;;  %s576_s12 = smov 64  }
  0x76   : > { %339 = dma.vmem_to_hbm [thread:$0]  (%p419_p10), %s835_s21, %s822_s15, %s833_s28, %s312_s9, %s575_s24, %s575_s24, %s576_s12  }
  0x77 PF: > { %s348_s14 = sand.u32 1, %s557_s16   ;;  %p888_p11 = scmp.ne.s32.totalorder %s887_s26, 0 }
  0x78   : > { %p889_p13 = scmp.ge.s32.totalorder %s569_s19, 2  ;;  %s349_s2 = scalar_lea.sflag [#allocation6], %s348_s14 }
  0x7a   : > { %p439_p7 = pnand %p889_p13, %p888_p11 }
  0x7c   : > { %p440_p8 = pneg %p439_p7 }
  0x7e   : > { %552 = dma.done.wait (%p440_p8), %s349_s2, 3072  }
  0x7f   : > { %554 = vsyncadd (%p440_p8), %s349_s2, 4294964224  ;;  %p18_p12 = scmp.ge.s32.totalorder %s628_s20, 4   ;;  %s890_s16 = smov %s561_s17 }
  0x80   : > { %s891_s17 = smov %s565_s18  ;;  %s892_s18 = smov %s640_s23 }
  0x81   : > { %s893_s19 = smov %s628_s20  ;;  %20 = sbr.rel (!%p18_p12) target bundleno = 8 (0x8), region = 77 }
  0x86   :  { %354 = vsyncpa [#allocation5], 1 }
  0x87   :  { %356 = vsyncpa [#allocation5 + $0x1], 1 }
  0x88   :  { %357 = vsyncpa [#allocation6], 1 }
  0x89   :  { %359 = vsyncpa [#allocation6 + $0x1], 1 }

</bundles_post_ra>
